<compile_context>
chip_gen: v6e
topology: v6e:2x2x1
jax: 0.10.0
libtpu: 0.0.40
codegen_flags: <defaults>
</compile_context>

<pallas_src>
import numpy as np
import jax
import jax.numpy as jnp
from jax import lax
from jax.experimental import pallas as pl
from jax.experimental.pallas import tpu as pltpu

MAX_TORQUE = 2.0   # gym Pendulum-v1 env.max_torque (hardcoded, no gym dep)
DT = 0.05          # gym Pendulum-v1 env.dt
LANE = 128
FEAT_PAD = 8       # K for matmul-1 padded to one sublane tile (not 128)
PARAM_ROWS = 16    # packed parameter buffer sublanes (multiple of 8)


# ----------------------------- Pallas kernels ----------------------------- #

def _policy(feat, p_ref):
    """Policy MLP on a (BP, 8) feature tile -> (BP, 1) control, all f32."""
    w1t = p_ref[0:8, :]                  # (8, H)   rows 3..7 are zero
    b1 = p_ref[8:9, :]                   # (1, H)
    w2r = p_ref[9:10, :]                 # (1, H)
    b2 = p_ref[10:11, 0:1]               # (1, 1)
    h = jnp.dot(feat, w1t, preferred_element_type=jnp.float32) + b1
    h = jnp.maximum(h, 0.0)                                       # ReLU
    z = jnp.sum(h * w2r, axis=-1, keepdims=True) + b2             # (BP, 1)
    # max_torque * (2*sigmoid(z) - 1) == max_torque * tanh(z/2)
    return MAX_TORQUE * jnp.tanh(0.5 * z)


def _npc_kernel(feat_ref, p_ref, out_ref):
    """learn_dynamics=False: policy MLP + squashing. Output lane-dense (u in every lane)."""
    u = _policy(feat_ref[...], p_ref)
    out_ref[...] = jnp.broadcast_to(u, out_ref.shape)


def _npc_kernel_dyn(dyn_ref, feat_ref, p_ref, out_ref):
    """learn_dynamics=True: policy + one learned-dynamics rollout step.

    Packed output lanes: 0 -> u, 1 -> x_pred, 2 -> y_pred (lanes >=3 hold u).
    """
    feat = feat_ref[...]                                  # (BP, 8)
    u = _policy(feat, p_ref)                              # (BP, 1)

    c1 = dyn_ref[0]
    c2 = dyn_ref[1]
    l = dyn_ref[2]

    x = feat[:, 0:1]
    y = feat[:, 1:2]
    td = feat[:, 2:3]

    # cos/sin of th = atan2(y, x) without the atan2 VALU polynomial.
    # NOTE: differs from atan2 only at x=y=0 (never happens for a pendulum head).
    r_inv = lax.rsqrt(x * x + y * y)
    cos_th = x * r_inv
    sin_th = y * r_inv

    td_new = td + (c1 * sin_th + c2 * u) * DT
    delta = td_new * DT
    cd = jnp.cos(delta)
    sd = jnp.sin(delta)
    xo = l * (cos_th * cd - sin_th * sd)                  # l * cos(th + delta)
    yo = l * (sin_th * cd + cos_th * sd)                  # l * sin(th + delta)

    bp, lanes = out_ref.shape
    lane_idx = lax.broadcasted_iota(jnp.int32, (bp, lanes), 1)
    u_b = jnp.broadcast_to(u, (bp, lanes))
    xo_b = jnp.broadcast_to(xo, (bp, lanes))
    yo_b = jnp.broadcast_to(yo, (bp, lanes))
    out_ref[...] = jnp.where(lane_idx == 1, xo_b,
                             jnp.where(lane_idx == 2, yo_b, u_b))


# ------------------------------- wrappers ---------------------------------- #

def pack_policy_params(w1, b1, w2, b2):
    """Pack the policy weights once into a single (16, H) f32 tile.

    rows 0-2: w1.T, rows 3-7: zero, row 8: b1, row 9: w2, row 10 lane 0: b2.
    Call once per parameter set and reuse across forward calls.
    """
    H = w1.shape[0]
    p = jnp.zeros((PARAM_ROWS, H), jnp.float32)
    p = p.at[0:3, :].set(jnp.asarray(w1, jnp.float32).T)
    p = p.at[8, :].set(jnp.asarray(b1, jnp.float32).reshape(H))
    p = p.at[9, :].set(jnp.asarray(w2, jnp.float32).reshape(H))
    p = p.at[10, 0].set(jnp.asarray(b2, jnp.float32).reshape(()))
    return p


def npc_forward(x, y, thdot, packed_params, dyn_params=None, learn_dynamics=False):
    """x, y, thdot: (B, 1) float32. packed_params: output of pack_policy_params.

    dyn_params = (c1, c2, l) scalars, required iff learn_dynamics.
    Returns (u, (x_pred, y_pred)); the latter is (None, None) if not learn_dynamics.
    """
    B = x.shape[0]
    BP = 8 * ((B + 7) // 8)                       # pad batch to sublane multiple of 8

    feat = jnp.concatenate([x, y, thdot], axis=-1).astype(jnp.float32)   # (B, 3)
    feat_p = jnp.zeros((BP, FEAT_PAD), jnp.float32).at[:B, :3].set(feat)  # (BP, 8)

    vmem = pl.BlockSpec(memory_space=pltpu.MemorySpace.VMEM)
    smem = pl.BlockSpec(memory_space=pltpu.MemorySpace.SMEM)

    if not learn_dynamics:
        out = pl.pallas_call(
            _npc_kernel,
            out_shape=jax.ShapeDtypeStruct((BP, LANE), jnp.float32),
            in_specs=[vmem, vmem],
            out_specs=vmem,
        )(feat_p, packed_params)
        return out[:B, 0:1], (None, None)

    c1, c2, l = dyn_params
    dyn = jnp.stack([jnp.asarray(c1, jnp.float32).reshape(()),
                     jnp.asarray(c2, jnp.float32).reshape(()),
                     jnp.asarray(l, jnp.float32).reshape(())])             # (3,) SMEM

    out = pl.pallas_call(
        _npc_kernel_dyn,
        out_shape=jax.ShapeDtypeStruct((BP, LANE), jnp.float32),
        in_specs=[smem, vmem, vmem],
        out_specs=vmem,
    )(dyn, feat_p, packed_params)
    return out[:B, 0:1], (out[:B, 1:2], out[:B, 2:3])


# -------------------------- pure-JAX reference ----------------------------- #

def npc_forward_ref(x, y, thdot, params, learn_dynamics=False):
    w1, b1, w2, b2, c1, c2, l = params
    u = jnp.concatenate([x, y, thdot], axis=-1)
    u = jnp.maximum(u @ w1.T + b1, 0.0) @ w2.T + b2
    u = MAX_TORQUE * (2.0 * jax.nn.sigmoid(u) - 1.0)
    if not learn_dynamics:
        return u, (None, None)
    th = jnp.arctan2(y, x)
    thdot = thdot + (c1 * jnp.sin(th) + c2 * u) * DT
    th = th + thdot * DT
    return u, (l * jnp.cos(th), l * jnp.sin(th))


# --------------------------------- main ------------------------------------ #

if __name__ == "__main__":
    B, H = 2, 128  # batch=2, hidden_dim=128 (module default)
    key = jax.random.PRNGKey(0)
    k_th, k_td, k_b1, k_b2, k_w1, k_w2, k_r = jax.random.split(key, 7)

    # inputs: pendulum head on unit circle + angular velocity
    th0 = jax.random.uniform(k_th, (B, 1), minval=-np.pi, maxval=np.pi)
    x = jnp.cos(th0).astype(jnp.float32)
    y = jnp.sin(th0).astype(jnp.float32)
    thdot = jax.random.uniform(k_td, (B, 1), minval=-8.0, maxval=8.0).astype(jnp.float32)

    # -------- test 1: module-default parameters (zero-filled Linear weights) ----
    w1 = jnp.zeros((H, 3), jnp.float32)
    b1 = jax.random.uniform(k_b1, (H,), minval=-1.0 / np.sqrt(3.0),
                            maxval=1.0 / np.sqrt(3.0)).astype(jnp.float32)
    w2 = jnp.zeros((1, H), jnp.float32)
    b2 = jax.random.uniform(k_b2, (1,), minval=-1.0 / np.sqrt(H),
                            maxval=1.0 / np.sqrt(H)).astype(jnp.float32)
    c1, c2, l = 1.0, 1.0, 0.0
    packed = pack_policy_params(w1, b1, w2, b2)        # cached once, reused below
    params_ref = (w1, b1, w2, b2, c1, c2, l)

    u, (xp, yp) = npc_forward(x, y, thdot, packed, learn_dynamics=False)
    u = jax.block_until_ready(u)
    u_ref, _ = npc_forward_ref(x, y, thdot, params_ref, learn_dynamics=False)
    assert xp is None and yp is None
    np.testing.assert_allclose(np.asarray(u), np.asarray(u_ref), rtol=1e-5, atol=1e-5)

    u2, (xp2, yp2) = npc_forward(x, y, thdot, packed, dyn_params=(c1, c2, l),
                                 learn_dynamics=True)
    jax.block_until_ready((u2, xp2, yp2))
    u2_ref, (xp2_ref, yp2_ref) = npc_forward_ref(x, y, thdot, params_ref,
                                                 learn_dynamics=True)
    np.testing.assert_allclose(np.asarray(u2), np.asarray(u2_ref), rtol=1e-5, atol=1e-5)
    np.testing.assert_allclose(np.asarray(xp2), np.asarray(xp2_ref), rtol=1e-5, atol=1e-5)
    np.testing.assert_allclose(np.asarray(yp2), np.asarray(yp2_ref), rtol=1e-5, atol=1e-5)

    # -------- test 2: random nonzero weights, l != 0, non-unit radius -----------
    w1r = (0.3 * jax.random.normal(k_w1, (H, 3))).astype(jnp.float32)
    w2r = (0.3 * jax.random.normal(k_w2, (1, H))).astype(jnp.float32)
    c1r, c2r, lr = 1.3, 0.7, 1.1
    rad = jax.random.uniform(k_r, (B, 1), minval=0.5, maxval=1.5).astype(jnp.float32)
    xr, yr = x * rad, y * rad
    packed_r = pack_policy_params(w1r, b1, w2r, b2)
    params_ref_r = (w1r, b1, w2r, b2, c1r, c2r, lr)

    u3, (xp3, yp3) = npc_forward(xr, yr, thdot, packed_r, dyn_params=(c1r, c2r, lr),
                                 learn_dynamics=True)
    jax.block_until_ready((u3, xp3, yp3))
    u3_ref, (xp3_ref, yp3_ref) = npc_forward_ref(xr, yr, thdot, params_ref_r,
                                                 learn_dynamics=True)
    np.testing.assert_allclose(np.asarray(u3), np.asarray(u3_ref), rtol=1e-5, atol=1e-5)
    np.testing.assert_allclose(np.asarray(xp3), np.asarray(xp3_ref), rtol=1e-5, atol=1e-5)
    np.testing.assert_allclose(np.asarray(yp3), np.asarray(yp3_ref), rtol=1e-5, atol=1e-5)

    print("KERNEL_OK")
</pallas_src>

<mosaic_0001>
module attributes {stable_mosaic.version = 11 : i64} {
  func.func @_npc_kernel(%arg0: memref<8x8xf32, #tpu.memory_space<vmem>>, %arg1: memref<16x128xf32, #tpu.memory_space<vmem>>, %arg2: memref<8x128xf32, #tpu.memory_space<vmem>>) attributes {dimension_semantics = [], scalar_prefetch = 0 : i64, scratch_operands = 0 : i64, tpu.core_type = #tpu.core_type<tc>} {
    %c0 = arith.constant 0 : index
    %c0_0 = arith.constant 0 : index
    %0 = vector.load %arg0[%c0, %c0_0] : memref<8x8xf32, #tpu.memory_space<vmem>>, vector<8x8xf32>
    %c0_1 = arith.constant 0 : index
    %c0_2 = arith.constant 0 : index
    %1 = vector.load %arg1[%c0_1, %c0_2] : memref<16x128xf32, #tpu.memory_space<vmem>>, vector<8x128xf32>
    %c8 = arith.constant 8 : index
    %c0_3 = arith.constant 0 : index
    %2 = vector.load %arg1[%c8, %c0_3] : memref<16x128xf32, #tpu.memory_space<vmem>>, vector<1x128xf32>
    %c9 = arith.constant 9 : index
    %c0_4 = arith.constant 0 : index
    %3 = vector.load %arg1[%c9, %c0_4] : memref<16x128xf32, #tpu.memory_space<vmem>>, vector<1x128xf32>
    %c10 = arith.constant 10 : index
    %c0_5 = arith.constant 0 : index
    %4 = vector.load %arg1[%c10, %c0_5] : memref<16x128xf32, #tpu.memory_space<vmem>>, vector<1x1xf32>
    %cst = arith.constant dense<0.000000e+00> : vector<8x128xf32>
    %5 = tpu.matmul %0, %1, %cst {dimension_numbers = #tpu.dot_dimension_numbers<[1], [0], [0], [1], [0, 0, 1, 1], [], []>} : vector<8x8xf32>, vector<8x128xf32>, vector<8x128xf32> -> vector<8x128xf32>
    %6 = vector.broadcast %2 : vector<1x128xf32> to vector<8x128xf32>
    %7 = arith.addf %5, %6 : vector<8x128xf32>
    %cst_6 = arith.constant 0.000000e+00 : f32
    %8 = vector.broadcast %cst_6 : f32 to vector<8x128xf32>
    %9 = arith.maximumf %7, %8 : vector<8x128xf32>
    %10 = vector.broadcast %3 : vector<1x128xf32> to vector<8x128xf32>
    %11 = arith.mulf %9, %10 : vector<8x128xf32>
    %cst_7 = arith.constant dense<0.000000e+00> : vector<8xf32>
    %12 = vector.multi_reduction <add>, %11, %cst_7 [1] : vector<8x128xf32> to vector<8xf32>
    %13 = vector.shape_cast %12 : vector<8xf32> to vector<8x1xf32>
    %14 = vector.broadcast %4 : vector<1x1xf32> to vector<8x1xf32>
    %15 = arith.addf %13, %14 : vector<8x1xf32>
    %cst_8 = arith.constant 5.000000e-01 : f32
    %16 = vector.broadcast %cst_8 : f32 to vector<8x1xf32>
    %17 = arith.mulf %16, %15 : vector<8x1xf32>
    %18 = math.tanh %17 : vector<8x1xf32>
    %cst_9 = arith.constant 2.000000e+00 : f32
    %19 = vector.broadcast %cst_9 : f32 to vector<8x1xf32>
    %20 = arith.mulf %19, %18 : vector<8x1xf32>
    %21 = vector.shape_cast %20 : vector<8x1xf32> to vector<8x1xf32>
    %22 = vector.broadcast %21 : vector<8x1xf32> to vector<8x128xf32>
    %c0_10 = arith.constant 0 : index
    %c0_11 = arith.constant 0 : index
    %23 = vector.load %arg2[%c0_10, %c0_11] : memref<8x128xf32, #tpu.memory_space<vmem>>, vector<8x128xf32>
    tpu.vector_store %arg2[%c0_10, %c0_11], %22 {strides = array<i32>} : memref<8x128xf32, #tpu.memory_space<vmem>>, vector<8x128xf32>,
    return
  }
}

</mosaic_0001>

<bundles_post_ra>
// kernel: tpu_custom_call.1
= control target key start
LH: loop header
LB: loop body
LE: loop exit
PB: predicated region body
PF: predicated region fallthrough
CT: control target
= control target key end

     0   :  { %7 = vsyncpa [#allocation3], 0  ;;  %s279_s0 = inlined_call_operand.hbm [shape: f32[8,8], index: 0, kind: input, shape index: {}]   ;;  %s280_s1 = inlined_call_operand.hbm [shape: f32[16,128], index: 1, kind: input, shape index: {}]   ;;  %s281_s2 = inlined_call_operand.hbm [shape: f32[8,128], index: 2, kind: output, shape index: {}]  }
   0x1   :  { %8 = vsyncpa [#allocation6], 0 }
   0x2   :  { %9 = vsyncpa [#allocation4], 0  ;;  %s247_s9 = smov [#allocation2]   ;;  %s248_s11 = smov [#allocation5]  }
   0x3   :  { %s16_s10 = sshll.u32 %s247_s9, 4  ;;  %s25_s12 = sshll.u32 %s248_s11, 4  ;;  %s17_s10 = int_to_ptr.vmem [resolvable:$true] %s16_s10  ;;  %s26_s12 = int_to_ptr.vmem [resolvable:$true] %s25_s12 }
   0x4   :  { %s189_s13 = scalar_lea.vmem %s17_s10, 128  ;;  %p194_p1 = scmp.lt.s32.totalorder %s17_s10, %s17_s10 }
   0x5   :  { %p190_p0 = scmp.ne.s32.totalorder %s17_s10, %s189_s13  ;;  %p195_p2 = scmp.lt.s32.totalorder %s189_s13, %s189_s13 }
   0x7   :  { %p196_p3 = por %p195_p2, %p194_p1 }
   0x9   :  { %p197_p4 = pnand %p196_p3, %p190_p0 }
   0xb   :  { %200 = shalt.err (!%p197_p4)
}
   0xc   :  { %19 = dma.hbm_to_vmem [thread:$0]  %s279_s0, 128, %s17_s10, [#allocation3]  }
   0xd   :  { %s209_s16 = scalar_lea.vmem %s26_s12, 256  ;;  %p214_p6 = scmp.lt.s32.totalorder %s26_s12, %s26_s12 }
   0xe   :  { %p210_p5 = scmp.ne.s32.totalorder %s26_s12, %s209_s16  ;;  %p215_p7 = scmp.lt.s32.totalorder %s209_s16, %s209_s16 }
  0x10   :  { %p216_p8 = por %p215_p7, %p214_p6 }
  0x12   :  { %p217_p9 = pnand %p216_p8, %p210_p5 }
  0x14   :  { %220 = shalt.err (!%p217_p9)
}
  0x15   :  { %s249_s17 = smov 128   ;;  %s250_s18 = smov 8  }
  0x16   :  { %31 = dma.hbm_to_vmem [thread:$0]  %s280_s1, 256, %s26_s12, [#allocation6], %s249_s17, %s249_s17, %s250_s18  }
  0x17   :  { %241 = dma.done.wait [#allocation3], 128  }
  0x18   :  { %242 = vsyncadd [#allocation3], 4294967168 }
  0x19   :  { %243 = dma.done.wait [#allocation6], 256  }
  0x1a   :  { %244 = vsyncadd [#allocation6], 4294967040  ;;  %v251_v0 = vmov 0.0   ;;  %vm252_vm0 = vmmov 0   ;;  %vm47_vm1 = vcmask 64512   ;;  %v39_v1 = vld [vmem:[#allocation5] sm:$0xff] }
  0x1b   :  { %165 = vmatprep.subr.mxu0 %v251_v0  ;;  %167 = vmatprep.mubr.msk.f32.mxu0 %vm252_vm0, %v251_v0  ;;  %v38_v2 = vld [vmem:[#allocation2] sm:$0xff]  ;;  %v159_v3 = vld [vmem:[#allocation5 + $0x8] ss:$0 sm:$0xff]  ;;  %v161_v7 = vld [vmem:[#allocation5 + $0x9] ss:$0 sm:$0xff]  ;;  %v253_v10 = vmov 0  }
  0x1c   :  { %166 = vmatpush3.msra.mxu0 %v39_v1  ;;  %178 = vset.pattern.permute.xlu0 %v253_v10  ;;  %v162_v11 = vld [vmem:[#allocation5 + $0xa] ss:$0 sm:$0xff]  ;;  %s254_s0 = smov [#allocation7]  }
  0x1d   :  { %168 = vmatmul.mubr.msk.f32.vlgmr.msra.gmra.mxu0 %vm47_vm1, %v38_v2  ;;  %s149_s1 = sshll.u32 %s254_s0, 4  ;;  %s150_s1 = int_to_ptr.vmem [resolvable:$true] %s149_s1 }
  0x1e   :  { %s221_s21 = scalar_lea.vmem %s150_s1, 128  ;;  %p226_p11 = scmp.lt.s32.totalorder %s150_s1, %s150_s1 }
  0x1f   :  { %p222_p10 = scmp.ne.s32.totalorder %s150_s1, %s221_s21  ;;  %p227_p12 = scmp.lt.s32.totalorder %s221_s21, %s221_s21 }
  0x21   :  { %p228_p13 = por %p227_p12, %p226_p11 }
  0x23   :  { %p229_p0 = pnand %p228_p13, %p222_p10 }
  0xdd   :  { %v117_v4 = vpop.f32.mrf.mxu0 }
  0xde   :  { %v118_v5 = vadd.f32 %v159_v3, %v117_v4 }
  0xdf   :  { %v169_v6 = vpop.f32.mrf.mxu0 }
  0xe0   :  { %v121_v8 = vmax.f32 %v118_v5, 0.0 }
  0xe2   :  { %v126_v9 = vmul.f32 %v161_v7, %v121_v8 }
  0xe4   :  { %127 = vadd.xlane.f32.xlu0 %v126_v9 }
 0x16d   :  { %v128_v12 = vpop.xlane.xlu0 %127 }
 0x16e   :  { %v133_v13 = vadd.f32 %v162_v11, %v128_v12 }
 0x170   :  { %v134_v14 = vmul.f32 0.5, %v133_v13 }
 0x172   :  { %179 = vtanh.f32 %v134_v14 }
 0x17f   :  { %v180_v15 = vpop.eup %179 }
 0x180   :  { %v136_v16 = vmul.f32 2.0, %v180_v15 }
 0x182   :  { %139 = vperm.xlu0 %178, %v136_v16  }
 0x1fd   :  { %v140_v17 = vpop.permute.xlu0 %139 }
 0x1fe   :  { %142 = vst [vmem:[#allocation7] sm:$0xff] %v140_v17 }
 0x1ff   :  { %232 = shalt.err (!%p229_p0)
}
 0x200   :  { %152 = dma.vmem_to_hbm [thread:$0]  %s150_s1, 128, %s281_s2, [#allocation4]  }
 0x201   :  { %245 = dma.done.wait [#allocation4], 128  }
 0x202   :  { %246 = vsyncadd [#allocation4], 4294967168 }
 0x203   :  { %156 = vsyncpa [#allocation3], 1 }
 0x204   :  { %157 = vsyncpa [#allocation6], 1 }
 0x205   :  { %158 = vsyncpa [#allocation4], 1 }

</bundles_post_ra>
